<compile_context>
chip_gen: v5e
topology: v5e:2x2
jax: 0.10.0
libtpu: 0.0.40
codegen_flags: <defaults>
</compile_context>

<pallas_src>
import functools

import jax
import jax.numpy as jnp
from jax.experimental import pallas as pl
from jax.experimental.pallas import tpu as pltpu


def _output_kernel(x0_ref, x1_ref, x2_ref, wa_ref, wb_ref, wc_ref, b_ref, o_ref):
    """One row-tile of the fused dual-Linear(2d -> 1).

    x*_ref : (tm, d)  activation row tiles of M0 / M1 / M2
    w*_ref : (d, 2)   packed split weights (resident across the grid)
    b_ref  : (1, 2)   bias row [b1, b2] (resident)
    o_ref  : (tm, 2)  output tile (col 0 = p1, col 1 = p2)
    """
    prec = jax.lax.Precision.HIGHEST  # exact-f32 MXU passes; compute is negligible
    acc = jnp.dot(x0_ref[...], wa_ref[...], precision=prec,
                  preferred_element_type=jnp.float32)
    acc = acc + jnp.dot(x1_ref[...], wb_ref[...], precision=prec,
                        preferred_element_type=jnp.float32)
    acc = acc + jnp.dot(x2_ref[...], wc_ref[...], precision=prec,
                        preferred_element_type=jnp.float32)
    o_ref[...] = (acc + b_ref[...]).astype(o_ref.dtype)


def _vmem_cap_bytes():
    """Generation-aware scoped-VMEM budget: physical minus ~16 MiB headroom."""
    try:
        phys = int(getattr(pltpu.get_tpu_info(), "vmem_capacity_bytes", 64 << 20))
    except Exception:
        phys = 64 << 20            # conservative (v7x per-TC) fallback
    return max(phys - (16 << 20), 32 << 20)


def _vmem_need(tm, d, itemsize):
    """Double-buffered working set for one grid step (inputs dominate)."""
    return (3 * 2 * tm * d * itemsize        # double-buffered activation tiles
            + 2 * tm * 2 * itemsize          # double-buffered (tm, 2) output tile
            + 3 * 2 * d * 2 * itemsize       # resident packed weights
            + (1 << 16))                     # bias + slack


def _pick_row_tile(N, d, itemsize, block_rows, vmem_cap):
    """Row tile: big (HBM streaming, ~8 MiB of activations per step), multiple
    of 128 when < N, auto-shrunk until the double-buffered set fits VMEM."""
    if block_rows is None:
        target = 8 << 20                            # input bytes per grid step
        tm = max(128, min(4096, (target // (3 * d * itemsize) // 128) * 128))
    else:
        tm = max(1, int(block_rows))
    tm = min(tm, N)
    if tm < N:
        tm = max(128, (tm // 128) * 128)
    # Shrink (never below 128) until the working set fits the scoped budget.
    while tm > 128 and _vmem_need(tm, d, itemsize) + (4 << 20) > vmem_cap:
        tm = max(128, ((tm // 2) // 128) * 128)
    return min(tm, N)


@functools.partial(jax.jit, static_argnames=("block_rows",))
def output_forward(M0, M1, M2, w1, b1, w2, b2, *, block_rows=None):
    """p1 = Linear([M0;M1]) squeezed, p2 = Linear([M0;M2]) squeezed.

    M0, M1, M2 : (B, L, d) float32
    w1, w2     : (2d,)  — weights of Linear(2d, 1), row vector
    b1, b2     : ()     — biases
    returns (p1, p2) each (B, L)
    """
    B, L, d = M0.shape
    N = B * L

    x0 = M0.reshape(N, d)
    x1 = M1.reshape(N, d)
    x2 = M2.reshape(N, d)

    zeros_d = jnp.zeros((d,), M0.dtype)
    # Pack the split weight vectors as (d, 2) matrices for MXU matmuls.
    Wa = jnp.stack([w1[:d], w2[:d]], axis=1)       # multiplies M0 (both heads)
    Wb = jnp.stack([w1[d:], zeros_d], axis=1)      # multiplies M1 (p1 only)
    Wc = jnp.stack([zeros_d, w2[d:]], axis=1)      # multiplies M2 (p2 only)
    bias = jnp.stack([b1, b2]).reshape(1, 2)

    itemsize = jnp.dtype(M0.dtype).itemsize
    vmem_cap = _vmem_cap_bytes()
    tm = _pick_row_tile(N, d, itemsize, block_rows, vmem_cap)
    grid = (pl.cdiv(N, tm),)

    need = _vmem_need(tm, d, itemsize)
    vmem_limit = int(min(max(need + (4 << 20), 32 << 20), vmem_cap))
    vmem_limit = max(vmem_limit, need + (1 << 20))   # never starve the pipeline

    cost = pl.CostEstimate(
        flops=12 * N * d,                              # 3 packed (tm,d)@(d,2) per row
        transcendentals=0,
        bytes_accessed=3 * N * d * itemsize + N * 2 * itemsize + 6 * d * itemsize,
    )

    out = pl.pallas_call(
        _output_kernel,
        out_shape=jax.ShapeDtypeStruct((N, 2), M0.dtype),
        grid_spec=pltpu.PrefetchScalarGridSpec(
            num_scalar_prefetch=0,
            grid=grid,
            in_specs=[
                pl.BlockSpec((tm, d), lambda i: (i, 0)),   # x0 rows
                pl.BlockSpec((tm, d), lambda i: (i, 0)),   # x1 rows
                pl.BlockSpec((tm, d), lambda i: (i, 0)),   # x2 rows
                pl.BlockSpec((d, 2), lambda i: (0, 0)),    # Wa (resident)
                pl.BlockSpec((d, 2), lambda i: (0, 0)),    # Wb
                pl.BlockSpec((d, 2), lambda i: (0, 0)),    # Wc
                pl.BlockSpec((1, 2), lambda i: (0, 0)),    # bias row
            ],
            out_specs=pl.BlockSpec((tm, 2), lambda i: (i, 0)),
        ),
        compiler_params=pltpu.CompilerParams(
            dimension_semantics=("parallel",),
            vmem_limit_bytes=vmem_limit,
        ),
        cost_estimate=cost,
    )(x0, x1, x2, Wa, Wb, Wc, bias)

    # Matches torch .squeeze() for B > 1 and L > 1 (rank differs when B or L == 1).
    p1 = out[:, 0].reshape(B, L)
    p2 = out[:, 1].reshape(B, L)
    return p1, p2


def _reference(M0, M1, M2, w1, b1, w2, b2):
    p1 = jnp.einsum("bld,d->bl", jnp.concatenate([M0, M1], -1), w1) + b1
    p2 = jnp.einsum("bld,d->bl", jnp.concatenate([M0, M2], -1), w2) + b2
    return p1, p2


def _make_inputs(key, B, L, d):
    k0, k1, k2, kw1, kw2, kb1, kb2 = jax.random.split(key, 7)
    M0 = jax.random.normal(k0, (B, L, d), jnp.float32)
    M1 = jax.random.normal(k1, (B, L, d), jnp.float32)
    M2 = jax.random.normal(k2, (B, L, d), jnp.float32)
    # Deterministic parameter init mirroring nn.Linear(2d, 1):
    #   weight: xavier_uniform, bound = sqrt(6 / (fan_in + fan_out))
    #   bias:   uniform(-1/sqrt(fan_in), 1/sqrt(fan_in))
    fan_in = 2 * d
    xav = (6.0 / (fan_in + 1)) ** 0.5
    bb = 1.0 / (fan_in ** 0.5)
    w1 = jax.random.uniform(kw1, (2 * d,), jnp.float32, -xav, xav)
    w2 = jax.random.uniform(kw2, (2 * d,), jnp.float32, -xav, xav)
    b1 = jax.random.uniform(kb1, (), jnp.float32, -bb, bb)
    b2 = jax.random.uniform(kb2, (), jnp.float32, -bb, bb)
    return M0, M1, M2, w1, b1, w2, b2


if __name__ == "__main__":
    key = jax.random.PRNGKey(0)
    k_small, k_tiled = jax.random.split(key)

    # Small shapes consistent with the module (module default is d=512).
    B, L, d = 2, 8, 32
    args = _make_inputs(k_small, B, L, d)
    p1, p2 = output_forward(*args)
    jax.block_until_ready((p1, p2))
    r1, r2 = _reference(*args)
    assert p1.shape == (B, L) and p2.shape == (B, L)
    assert jnp.allclose(p1, r1, atol=1e-4, rtol=1e-4)
    assert jnp.allclose(p2, r2, atol=1e-4, rtol=1e-4)

    # Second check exercising the multi-step (tiled) grid path.
    B2, L2, d2 = 2, 256, 64   # N = 512; block_rows=128 -> grid = (4,)
    args2 = _make_inputs(k_tiled, B2, L2, d2)
    q1, q2 = output_forward(*args2, block_rows=128)
    jax.block_until_ready((q1, q2))
    s1, s2 = _reference(*args2)
    assert jnp.allclose(q1, s1, atol=1e-4, rtol=1e-4)
    assert jnp.allclose(q2, s2, atol=1e-4, rtol=1e-4)

    print("KERNEL_OK")
</pallas_src>

<mosaic_0001>
module attributes {stable_mosaic.version = 11 : i64} {
  func.func @_output_kernel(%arg0: i32, %arg1: memref<16x32xf32, #tpu.memory_space<vmem>>, %arg2: memref<16x32xf32, #tpu.memory_space<vmem>>, %arg3: memref<16x32xf32, #tpu.memory_space<vmem>>, %arg4: memref<32x2xf32, #tpu.memory_space<vmem>>, %arg5: memref<32x2xf32, #tpu.memory_space<vmem>>, %arg6: memref<32x2xf32, #tpu.memory_space<vmem>>, %arg7: memref<1x2xf32, #tpu.memory_space<vmem>>, %arg8: memref<16x2xf32, #tpu.memory_space<vmem>>) attributes {dimension_semantics = [#tpu.dimension_semantics<parallel>], iteration_bounds = array<i64: 1>, scalar_prefetch = 0 : i64, scratch_operands = 0 : i64, tpu.core_type = #tpu.core_type<tc>, window_params = [{transform_indices = @transform_0, window_bounds = array<i64: 16, 32>}, {transform_indices = @transform_1, window_bounds = array<i64: 16, 32>}, {transform_indices = @transform_2, window_bounds = array<i64: 16, 32>}, {pipeline_mode = #tpu.pipeline_mode<synchronous>, transform_indices = @transform_3, window_bounds = array<i64: 32, 2>}, {pipeline_mode = #tpu.pipeline_mode<synchronous>, transform_indices = @transform_4, window_bounds = array<i64: 32, 2>}, {pipeline_mode = #tpu.pipeline_mode<synchronous>, transform_indices = @transform_5, window_bounds = array<i64: 32, 2>}, {pipeline_mode = #tpu.pipeline_mode<synchronous>, transform_indices = @transform_6, window_bounds = array<i64: 1, 2>}, {transform_indices = @transform_7, window_bounds = array<i64: 16, 2>}]} {
    %c0 = arith.constant 0 : index
    %c0_0 = arith.constant 0 : index
    %0 = vector.load %arg1[%c0, %c0_0] : memref<16x32xf32, #tpu.memory_space<vmem>>, vector<16x32xf32>
    %c0_1 = arith.constant 0 : index
    %c0_2 = arith.constant 0 : index
    %1 = vector.load %arg4[%c0_1, %c0_2] : memref<32x2xf32, #tpu.memory_space<vmem>>, vector<32x2xf32>
    %cst = arith.constant dense<0.000000e+00> : vector<16x2xf32>
    %2 = tpu.matmul %0, %1, %cst {dimension_numbers = #tpu.dot_dimension_numbers<[1], [0], [0], [1], [0, 0, 1, 1], [], []>, precision = #tpu.contract_precision<fp32>} : vector<16x32xf32>, vector<32x2xf32>, vector<16x2xf32> -> vector<16x2xf32>
    %c0_3 = arith.constant 0 : index
    %c0_4 = arith.constant 0 : index
    %3 = vector.load %arg2[%c0_3, %c0_4] : memref<16x32xf32, #tpu.memory_space<vmem>>, vector<16x32xf32>
    %c0_5 = arith.constant 0 : index
    %c0_6 = arith.constant 0 : index
    %4 = vector.load %arg5[%c0_5, %c0_6] : memref<32x2xf32, #tpu.memory_space<vmem>>, vector<32x2xf32>
    %cst_7 = arith.constant dense<0.000000e+00> : vector<16x2xf32>
    %5 = tpu.matmul %3, %4, %cst_7 {dimension_numbers = #tpu.dot_dimension_numbers<[1], [0], [0], [1], [0, 0, 1, 1], [], []>, precision = #tpu.contract_precision<fp32>} : vector<16x32xf32>, vector<32x2xf32>, vector<16x2xf32> -> vector<16x2xf32>
    %6 = arith.addf %2, %5 : vector<16x2xf32>
    %c0_8 = arith.constant 0 : index
    %c0_9 = arith.constant 0 : index
    %7 = vector.load %arg3[%c0_8, %c0_9] : memref<16x32xf32, #tpu.memory_space<vmem>>, vector<16x32xf32>
    %c0_10 = arith.constant 0 : index
    %c0_11 = arith.constant 0 : index
    %8 = vector.load %arg6[%c0_10, %c0_11] : memref<32x2xf32, #tpu.memory_space<vmem>>, vector<32x2xf32>
    %cst_12 = arith.constant dense<0.000000e+00> : vector<16x2xf32>
    %9 = tpu.matmul %7, %8, %cst_12 {dimension_numbers = #tpu.dot_dimension_numbers<[1], [0], [0], [1], [0, 0, 1, 1], [], []>, precision = #tpu.contract_precision<fp32>} : vector<16x32xf32>, vector<32x2xf32>, vector<16x2xf32> -> vector<16x2xf32>
    %10 = arith.addf %6, %9 : vector<16x2xf32>
    %c0_13 = arith.constant 0 : index
    %c0_14 = arith.constant 0 : index
    %11 = vector.load %arg7[%c0_13, %c0_14] : memref<1x2xf32, #tpu.memory_space<vmem>>, vector<1x2xf32>
    %12 = vector.broadcast %11 : vector<1x2xf32> to vector<16x2xf32>
    %13 = arith.addf %10, %12 : vector<16x2xf32>
    %c0_15 = arith.constant 0 : index
    %c0_16 = arith.constant 0 : index
    %14 = vector.load %arg8[%c0_15, %c0_16] : memref<16x2xf32, #tpu.memory_space<vmem>>, vector<16x2xf32>
    tpu.vector_store %arg8[%c0_15, %c0_16], %13 {strides = array<i32>} : memref<16x2xf32, #tpu.memory_space<vmem>>, vector<16x2xf32>,
    return
  }
  func.func @transform_0(%arg0: i32) -> (i32, i32) {
    %c0_i32 = arith.constant 0 : i32
    %c0_i32_0 = arith.constant 0 : i32
    return %arg0, %c0_i32 : i32, i32
  }
  func.func @transform_1(%arg0: i32) -> (i32, i32) {
    %c0_i32 = arith.constant 0 : i32
    %c0_i32_0 = arith.constant 0 : i32
    return %arg0, %c0_i32 : i32, i32
  }
  func.func @transform_2(%arg0: i32) -> (i32, i32) {
    %c0_i32 = arith.constant 0 : i32
    %c0_i32_0 = arith.constant 0 : i32
    return %arg0, %c0_i32 : i32, i32
  }
  func.func @transform_3(%arg0: i32) -> (i32, i32) {
    %c0_i32 = arith.constant 0 : i32
    %c0_i32_0 = arith.constant 0 : i32
    %c0_i32_1 = arith.constant 0 : i32
    return %c0_i32, %c0_i32_0 : i32, i32
  }
  func.func @transform_4(%arg0: i32) -> (i32, i32) {
    %c0_i32 = arith.constant 0 : i32
    %c0_i32_0 = arith.constant 0 : i32
    %c0_i32_1 = arith.constant 0 : i32
    return %c0_i32, %c0_i32_0 : i32, i32
  }
  func.func @transform_5(%arg0: i32) -> (i32, i32) {
    %c0_i32 = arith.constant 0 : i32
    %c0_i32_0 = arith.constant 0 : i32
    %c0_i32_1 = arith.constant 0 : i32
    return %c0_i32, %c0_i32_0 : i32, i32
  }
  func.func @transform_6(%arg0: i32) -> (i32, i32) {
    %c0_i32 = arith.constant 0 : i32
    %c0_i32_0 = arith.constant 0 : i32
    %c0_i32_1 = arith.constant 0 : i32
    return %c0_i32, %c0_i32_0 : i32, i32
  }
  func.func @transform_7(%arg0: i32) -> (i32, i32) {
    %c0_i32 = arith.constant 0 : i32
    %c0_i32_0 = arith.constant 0 : i32
    return %arg0, %c0_i32 : i32, i32
  }
}

</mosaic_0001>

<bundles_post_ra>
// kernel: squeeze.2
= control target key start
LH: loop header
LB: loop body
LE: loop exit
PB: predicated region body
PF: predicated region fallthrough
CT: control target
= control target key end

     0   :  { %s80_s0 = inlined_call_operand.vmem [shape: f32[16], index: 0, kind: input, shape index: {}]   ;;  %s81_s1 = inlined_call_operand.hbm [shape: f32[2,8], index: 1, kind: output, shape index: {}]  }
   0x1   :  { %v5_v0 = vld [vmem:[%s80_s0] sm:$0x1] }
   0x2   :  { %2 = vsyncpa [#allocation1], 0  ;;  %6 = vst [vmem:[#allocation3] sm:$0x1] %v5_v0  ;;  %vm8_vm0 = vcmask 64512   ;;  %s62_s0 = smov 120  }
   0x3   :  { %s63_s8 = smov [#allocation0]   ;;  %s27_s1 = sshll.u32 %s81_s1, 4  ;;  %s28_s1 = int_to_ptr.hbm [resolvable:$true] %s27_s1 }
   0x4   :  { %s25_s9 = sshll.u32 %s63_s8, 4  ;;  %s26_s9 = int_to_ptr.vmem [resolvable:$true] %s25_s9 }
   0x9   :  { %v10_v1 = vld [vmem:[#allocation3] sm:$0x1]  }
   0xa   :  { %v7_v2 = vld [vmem:[#allocation3] sm:$0x1]   ;;  %11 = vrot.lane.b32.xlu0 %v10_v1, %s62_s0 }
   0xb   :  { %9 = vst.msk [vmem:[#allocation2] sm:$0x1] %vm8_vm0, %v7_v2  }
  0x7c   :  { %v12_v3 = vpop.permute.xlu0 %11  }
  0x7d   :  { %15 = vst.msk [vmem:[#allocation2 + $0x1] sm:$0x1] %vm8_vm0, %v12_v3  }
  0x84   :  { %v18_v4 = vld [vmem:[#allocation2] sm:$0x3] }
  0x85   :  { %21 = vst [vmem:[#allocation0] sm:$0x3] %v18_v4 }
  0x86   :  { %30 = dma.vmem_to_hbm [thread:$0]  %s26_s9, 32, %s28_s1, [#allocation1]  }
  0x87   :  { %60 = dma.done.wait [#allocation1], 32  }
  0x88   :  { %61 = vsyncadd [#allocation1], 4294967264 }
  0x89   :  { %33 = vsyncpa [#allocation1], 1 }

// kernel: output_forward.1
= control target key start
LH: loop header
LB: loop body
LE: loop exit
PB: predicated region body
PF: predicated region fallthrough
CT: control target
= control target key end

     0   :  { %vm38_vm0 = vcmask 261120   ;;  %vm719_vm1 = vcmask 15360   ;;  %s1064_s4 = inlined_call_operand.vmem [shape: f32[32,2], index: 4, kind: input, shape index: {}]   ;;  %s1065_s1 = inlined_call_operand.vmem [shape: f32[16,32], index: 1, kind: input, shape index: {}]   ;;  %s1066_s3 = inlined_call_operand.vmem [shape: f32[32,2], index: 3, kind: input, shape index: {}]   ;;  %s1067_s0 = inlined_call_operand.vmem [shape: f32[16,32], index: 0, kind: input, shape index: {}]   ;;  %s1068_s5 = inlined_call_operand.vmem [shape: f32[32,2], index: 5, kind: input, shape index: {}]   ;;  %s1069_s2 = inlined_call_operand.vmem [shape: f32[16,32], index: 2, kind: input, shape index: {}]   ;;  %s1070_s6 = inlined_call_operand.vmem [shape: f32[1,2], index: 6, kind: input, shape index: {}]   ;;  %s1071_s7 = inlined_call_operand.vmem [shape: f32[16,2], index: 7, kind: output, shape index: {}]  }
   0x1   :  { %v37_v0 = vld [vmem:[%s1064_s4 + $0x18] sm:$0xff]  ;;  %v36_v1 = vld [vmem:[%s1064_s4 + $0x10] sm:$0xff]  ;;  %v35_v2 = vld [vmem:[%s1064_s4 + $0x8] sm:$0xff] }
   0x2   :  { %v784_v3 = vand.u32 4294901760, %v37_v0  ;;  %v786_v4 = vand.u32 4294901760, %v36_v1  ;;  %v788_v5 = vand.u32 4294901760, %v35_v2  ;;  %v34_v6 = vld [vmem:[%s1064_s4] sm:$0xff]  ;;  %v33_v7 = vld [vmem:[%s1065_s1 + $0x8] sm:$0xff]  ;;  %v31_v16 = vld [vmem:[%s1066_s3 + $0x18] sm:$0xff] }
   0x3   :  { %v32_v8 = vld [vmem:[%s1065_s1] sm:$0xff]  ;;  %v799_v9 = vand.u32 4294901760, %v34_v6  ;;  %v43_v10 = vsel %vm38_vm0, %v33_v7, 0  ;;  %v30_v23 = vld [vmem:[%s1066_s3 + $0x10] sm:$0xff]  ;;  %v833_v26 = vand.u32 4294901760, %v31_v16  ;;  %v29_v33 = vld [vmem:[%s1066_s3 + $0x8] sm:$0xff] }
   0x4   :  { %v40_v11 = vsel %vm38_vm0, %v32_v8, 0  ;;  %726 = vmatpush.msra.mxu2 %v784_v3  ;;  %v95_v12 = vsub.f32 %v37_v0, %v784_v3  ;;  %v805_v13 = vand.u32 4294901760, %v43_v10  ;;  %v101_v14 = vsub.f32 %v36_v1, %v786_v4  ;;  %58 = vmatpush.msra.mxu0 %v784_v3  ;;  %v28_v39 = vld [vmem:[%s1066_s3] sm:$0xff]  ;;  %v488_v55 = vld [vmem:[%s1068_s5 + $0x18] sm:$0xff]  ;;  %v27_v58 = vld [vmem:[%s1067_s0 + $0x8] sm:$0xff] }
   0x5   :  { %v809_v15 = vsub.f32 %v35_v2, %v788_v5  ;;  %v816_v17 = vsub.f32 %v34_v6, %v799_v9  ;;  %v818_v18 = vand.u32 4294901760, %v40_v11  ;;  %v842_v32 = vand.u32 4294901760, %v30_v23  ;;  %v26_v44 = vld [vmem:[%s1067_s0] sm:$0xff]  ;;  %v487_v63 = vld [vmem:[%s1068_s5 + $0x10] sm:$0xff] }
   0x6   :  { %727 = vmatpush.msra.mxu2 %v786_v4  ;;  %v96_v19 = vand.u32 4294901760, %v95_v12  ;;  %v822_v20 = vsub.f32 %v43_v10, %v805_v13  ;;  %v102_v21 = vand.u32 4294901760, %v101_v14  ;;  %60 = vmatpush.msra.mxu0 %v786_v4  ;;  %v862_v42 = vsub.f32 %v31_v16, %v833_v26 }
   0x7   :  { %v108_v22 = vand.u32 4294901760, %v809_v15  ;;  %v114_v24 = vand.u32 4294901760, %v816_v17  ;;  %v831_v25 = vsub.f32 %v40_v11, %v818_v18  ;;  %v864_v43 = vand.u32 4294901760, %v29_v33  ;;  %v485_v11 = vld [vmem:[%s1068_s5] sm:$0xff] }
   0x8   :  { %728 = vmatpush.msra.mxu2 %v788_v5  ;;  %v97_v27 = vsub.f32 %v95_v12, %v96_v19  ;;  %v75_v28 = vand.u32 4294901760, %v822_v20  ;;  %v103_v29 = vsub.f32 %v101_v14, %v102_v21  ;;  %62 = vmatpush.msra.mxu0 %v788_v5  ;;  %v870_v47 = vsub.f32 %v30_v23, %v842_v32 }
   0x9   :  { %v109_v30 = vsub.f32 %v809_v15, %v108_v22  ;;  %v67_v31 = vand.u32 4294901760, %v831_v25  ;;  %v115_v37 = vsub.f32 %v816_v17, %v114_v24  ;;  %v872_v48 = vand.u32 4294901760, %v28_v39 }
   0xa   :  { %729 = vmatpush.msra.mxu2 %v799_v9  ;;  %v98_v34 = vand.u32 4294901760, %v97_v27  ;;  %v76_v35 = vsub.f32 %v822_v20, %v75_v28  ;;  %v104_v36 = vand.u32 4294901760, %v103_v29  ;;  %64 = vmatpush.msra.mxu0 %v799_v9  ;;  %v262_v49 = vsel %vm38_vm0, %v26_v44, 0 }
   0xb   :  { %v68_v38 = vsub.f32 %v831_v25, %v67_v31  ;;  %v110_v41 = vand.u32 4294901760, %v109_v30  ;;  %v116_v46 = vand.u32 4294901760, %v115_v37  ;;  %v318_v50 = vand.u32 4294901760, %v862_v42 }
   0xc   :  { %141 = vmatpush.msrb.mxu2 %v95_v12  ;;  %210 = vmatpush.msrb.mxu0 %v96_v19  ;;  %v77_v40 = vand.u32 4294901760, %v76_v35  ;;  %v878_v51 = vsub.f32 %v29_v33, %v864_v43  ;;  %v324_v52 = vand.u32 4294901760, %v870_v47  ;;  %v883_v53 = vand.u32 4294901760, %v262_v49  ;;  %v484_v35 = vld [vmem:[%s1069_s2 + $0x8] sm:$0xff] }
   0xd   :  { %730 = vmatpush.msra.mxu3 %v98_v34  ;;  %99 = vmatpush.msra.mxu1 %v98_v34  ;;  %v69_v45 = vand.u32 4294901760, %v68_v38  ;;  %v886_v54 = vsub.f32 %v28_v39, %v872_v48  ;;  %v319_v56 = vsub.f32 %v862_v42, %v318_v50  ;;  %v903_v59 = vand.u32 4294901760, %v488_v55 }
   0xe   :  { %144 = vmatpush.msrb.mxu2 %v101_v14  ;;  %214 = vmatpush.msrb.mxu0 %v102_v21  ;;  %v330_v57 = vand.u32 4294901760, %v878_v51  ;;  %v325_v60 = vsub.f32 %v870_v47, %v324_v52  ;;  %v911_v61 = vsub.f32 %v262_v49, %v883_v53  ;;  %v265_v0 = vsel %vm38_vm0, %v27_v58, 0 }
   0xf   :  { %78 = vmatmul.f32.vlgmr.msra.gmra.mxu2 %v77_v40  ;;  %731 = vmatpush.msra.mxu3 %v104_v36  ;;  %v336_v62 = vand.u32 4294901760, %v886_v54  ;;  %v320_v1 = vand.u32 4294901760, %v319_v56  ;;  %v935_v6 = vand.u32 4294901760, %v487_v63  ;;  %v493_v40 = vsel %vm38_vm0, %v484_v35, 0 }
  0x10   :  { %147 = vmatpush.msrb.mxu2 %v809_v15  ;;  %105 = vmatpush.msra.mxu1 %v104_v36  ;;  %v331_v2 = vsub.f32 %v878_v51, %v330_v57  ;;  %v326_v7 = vand.u32 4294901760, %v325_v60  ;;  %v289_v8 = vand.u32 4294901760, %v911_v61 }
  0x11   :  { %732 = vmatpush.msra.mxu3 %v110_v41  ;;  %70 = vmatmul.f32.vlgmr.msra.gmra.mxu0 %v69_v45  ;;  %v337_v10 = vsub.f32 %v886_v54, %v336_v62  ;;  %v958_v16 = vsub.f32 %v487_v63, %v935_v6 }
  0x12   :  { %150 = vmatpush.msrb.mxu2 %v816_v17  ;;  %111 = vmatpush.msra.mxu1 %v110_v41  ;;  %v332_v14 = vand.u32 4294901760, %v331_v2  ;;  %v960_v17 = vand.u32 4294901760, %v485_v11 }
  0x13   :  { %733 = vmatpush.msra.mxu3 %v116_v46  ;;  %218 = vmatpush.msrb.mxu0 %v108_v22  ;;  %v483_v22 = vld [vmem:[%s1069_s2] sm:$0xff] }
  0x14   :  { %280 = vmatpush.msra.mxu2 %v833_v26  ;;  %123 = vmatmul.f32.vlgmr.msra.gmra.mxu3 %v805_v13 }
  0x15   :  { %117 = vmatpush.msra.mxu1 %v116_v46  ;;  %175 = vmatpush.msrb.mxu3 %v784_v3 }
  0x16   :  { %119 = vmatmul.f32.vlgmr.msra.gmra.mxu1 %v818_v18  ;;  %282 = vmatpush.msra.mxu2 %v842_v32 }
  0x17   :  { %245 = vmatpush.msrb.mxu1 %v784_v3  ;;  %153 = vmatmul.f32.vlgmr.msrb.gmra.mxu2 %v831_v25  ;;  %v486_v3 = vld [vmem:[%s1068_s5 + $0x8] sm:$0xff]  ;;  %v986_v25 = vsub.f32 %v485_v11, %v960_v17 }
  0x18   :  { %177 = vmatpush.msrb.mxu3 %v786_v4  ;;  %284 = vmatpush.msra.mxu2 %v864_v43  ;;  %v951_v12 = vand.u32 4294901760, %v486_v3 }
  0x19   :  { %247 = vmatpush.msrb.mxu1 %v786_v4  ;;  %222 = vmatpush.msrb.mxu0 %v114_v24  ;;  %v933_v4 = vsub.f32 %v488_v55, %v903_v59  ;;  %v552_v24 = vand.u32 4294901760, %v958_v16 }
  0x1a   :  { %179 = vmatpush.msrb.mxu3 %v788_v5  ;;  %224 = vmatmul.f32.vlgmr.msrb.gmra.mxu0 %v818_v18  ;;  %v972_v21 = vsub.f32 %v486_v3, %v951_v12 }
  0x1b   :  { %249 = vmatpush.msrb.mxu1 %v788_v5  ;;  %v943_v5 = vand.u32 4294901760, %v265_v0  ;;  %363 = vmatpush.msra.mxu0 %v862_v42  ;;  %v546_v15 = vand.u32 4294901760, %v933_v4 }
  0x1c   :  { %181 = vmatpush.msrb.mxu3 %v799_v9  ;;  %286 = vmatpush.msra.mxu2 %v872_v48  ;;  %v558_v30 = vand.u32 4294901760, %v972_v21 }
  0x1d   :  { %185 = vmatmul.f32.vlgmr.msrb.gmra.mxu3 %v67_v31  ;;  %251 = vmatpush.msrb.mxu1 %v799_v9  ;;  %v290_v9 = vsub.f32 %v911_v61, %v289_v8  ;;  %v967_v19 = vsub.f32 %v265_v0, %v943_v5  ;;  %v547_v23 = vsub.f32 %v933_v4, %v546_v15  ;;  %v490_v31 = vsel %vm38_vm0, %v483_v22, 0 }
  0x1e   :  { %321 = vmatpush.msra.mxu3 %v320_v1  ;;  %253 = vmatmul.f32.vlgmr.msrb.gmra.mxu1 %v818_v18  ;;  %v338_v18 = vand.u32 4294901760, %v337_v10 }
  0x1f   :  { %158 = vmatmul.f32.gmra.mxu2 %v822_v20  ;;  %397 = vmatpush.msra.mxu1 %v833_v26  ;;  %v291_v27 = vand.u32 4294901760, %v290_v9  ;;  %v297_v29 = vand.u32 4294901760, %v967_v19  ;;  %v548_v33 = vand.u32 4294901760, %v547_v23  ;;  %v553_v20 = vsub.f32 %v958_v16, %v552_v24 }
  0x20   :  { %327 = vmatpush.msra.mxu3 %v326_v7  ;;  %366 = vmatpush.msra.mxu0 %v870_v47 }
  0x21   :  { %432 = vmatpush.msrb.mxu2 %v318_v50  ;;  %399 = vmatpush.msra.mxu1 %v842_v32  ;;  %v298_v34 = vsub.f32 %v967_v19, %v297_v29 }
  0x22   :  { %333 = vmatpush.msra.mxu3 %v332_v14  ;;  %369 = vmatpush.msra.mxu0 %v878_v51 }
  0x23   :  { %228 = vmatmul.f32.gmra.mxu0 %v805_v13  ;;  %401 = vmatpush.msra.mxu1 %v864_v43  ;;  %v299_v37 = vand.u32 4294901760, %v298_v34 }
  0x24   :  { %339 = vmatpush.msra.mxu3 %v338_v18  ;;  %436 = vmatpush.msrb.mxu2 %v324_v52 }
  0x25   :  { %191 = vmatmul.f32.gmra.mxu3 %v75_v28  ;;  %372 = vmatpush.msra.mxu0 %v886_v54  ;;  %v564_v28 = vand.u32 4294901760, %v986_v25 }
  0x26   :  { %257 = vmatmul.f32.gmra.mxu1 %v805_v13  ;;  %467 = vmatpush.msrb.mxu3 %v833_v26  ;;  %v1006_v13 = vand.u32 4294901760, %v490_v31  ;;  %v559_v26 = vsub.f32 %v972_v21, %v558_v30 }
  0x27   :  { %292 = vmatmul.f32.vlgmr.msra.gmra.mxu2 %v291_v27  ;;  %403 = vmatpush.msra.mxu1 %v872_v48  ;;  %v565_v36 = vsub.f32 %v986_v25, %v564_v28 }
  0x28   :  { %469 = vmatpush.msrb.mxu3 %v842_v32  ;;  %440 = vmatpush.msrb.mxu2 %v330_v57  ;;  %v554_v32 = vand.u32 4294901760, %v553_v20  ;;  %v516_v38 = vsub.f32 %v490_v31, %v1006_v13  ;;  %v560_v39 = vand.u32 4294901760, %v559_v26 }
  0x29   :  { %508 = vmatpush.msrb.mxu0 %v903_v59  ;;  %549 = vmatpush.msrb.mxu1 %v548_v33  ;;  %v566_v41 = vand.u32 4294901760, %v565_v36 }
  0x2a   :  { %471 = vmatpush.msrb.mxu3 %v864_v43  ;;  %444 = vmatpush.msrb.mxu2 %v336_v62  ;;  %v517_v42 = vand.u32 4294901760, %v516_v38  ;;  %v523_v43 = vand.u32 4294901760, %v493_v40 }
  0x2b   :  { %375 = vmatmul.f32.vlgmr.msra.gmra.mxu0 %v911_v61  ;;  %555 = vmatpush.msrb.mxu1 %v554_v32 }
  0x2c   :  { %473 = vmatpush.msrb.mxu3 %v872_v48  ;;  %510 = vmatpush.msrb.mxu0 %v935_v6  ;;  %v518_v44 = vsub.f32 %v516_v38, %v517_v42  ;;  %v524_v45 = vsub.f32 %v493_v40, %v523_v43 }
  0x2d   :  { %341 = vmatmul.f32.vlgmr.msra.gmra.mxu3 %v883_v53  ;;  %591 = vmatpush.msra.mxu2 %v933_v4 }
  0x2e   :  { %407 = vmatmul.f32.vlgmr.msra.gmra.mxu1 %v289_v8  ;;  %512 = vmatpush.msrb.mxu0 %v951_v12  ;;  %v519_v46 = vand.u32 4294901760, %v518_v44  ;;  %v525_v47 = vand.u32 4294901760, %v524_v45  ;;  %v734_v44 = vld [vmem:[%s1070_s6] ss:$0 sm:$0xff] }
  0x2f   :  { %300 = vmatmul.f32.gmra.mxu2 %v299_v37  ;;  %625 = vmatpush.msra.mxu3 %v903_v59 }
  0x30   :  { %561 = vmatpush.msrb.mxu1 %v560_v39  ;;  %594 = vmatpush.msra.mxu2 %v958_v16  ;;  %v526_v48 = vsub.f32 %v524_v45, %v525_v47 }
  0x31   :  { %514 = vmatpush.msrb.mxu0 %v960_v17  ;;  %627 = vmatpush.msra.mxu3 %v935_v6 }
  0x32   :  { %567 = vmatpush.msrb.mxu1 %v566_v41  ;;  %597 = vmatpush.msra.mxu2 %v972_v21  ;;  %v527_v49 = vand.u32 4294901760, %v526_v48 }
  0x33   :  { %380 = vmatmul.f32.gmra.mxu0 %v967_v19  ;;  %629 = vmatpush.msra.mxu3 %v951_v12 }
  0x34   :  { %660 = vmatpush.msra.mxu0 %v546_v15  ;;  %600 = vmatpush.msra.mxu2 %v986_v25 }
  0x35   :  { %345 = vmatmul.f32.gmra.mxu3 %v943_v5  ;;  %695 = vmatpush.msra.mxu1 %v903_v59 }
  0x36   :  { %413 = vmatmul.f32.gmra.mxu1 %v297_v29  ;;  %631 = vmatpush.msra.mxu3 %v960_v17 }
  0x37   :  { %446 = vmatmul.f32.vlgmr.msrb.gmra.mxu2 %v883_v53  ;;  %664 = vmatpush.msra.mxu0 %v552_v24 }
  0x38   :  { %697 = vmatpush.msra.mxu1 %v935_v6 }
  0x39   :  { %668 = vmatpush.msra.mxu0 %v558_v30 }
  0x3a   :  { %699 = vmatpush.msra.mxu1 %v951_v12 }
  0x3b   :  { %520 = vmatmul.f32.vlgmr.msrb.gmra.mxu0 %v519_v46 }
  0x3c   :  { %672 = vmatpush.msra.mxu0 %v564_v28  ;;  %701 = vmatpush.msra.mxu1 %v960_v17 }
  0x3d   :  { %475 = vmatmul.f32.vlgmr.msrb.gmra.mxu3 %v883_v53 }
  0x3e   :  { %569 = vmatmul.f32.vlgmr.msrb.gmra.mxu1 %v1006_v13 }
  0x3f   :  { %450 = vmatmul.f32.gmra.mxu2 %v943_v5 }
  0x43   :  { %528 = vmatmul.f32.gmra.mxu0 %v527_v49 }
  0x45   :  { %479 = vmatmul.f32.gmra.mxu3 %v943_v5 }
  0x46   :  { %573 = vmatmul.f32.gmra.mxu1 %v523_v43 }
  0x47   :  { %603 = vmatmul.f32.vlgmr.msra.gmra.mxu2 %v516_v38 }
  0x4b   :  { %674 = vmatmul.f32.vlgmr.msra.gmra.mxu0 %v1006_v13 }
  0x4d   :  { %635 = vmatmul.f32.vlgmr.msra.gmra.mxu3 %v517_v42 }
  0x4e   :  { %703 = vmatmul.f32.vlgmr.msra.gmra.mxu1 %v1006_v13 }
  0x4f   :  { %608 = vmatmul.f32.gmra.mxu2 %v524_v45 }
  0x53   :  { %678 = vmatmul.f32.gmra.mxu0 %v523_v43 }
  0x55   :  { %641 = vmatmul.f32.gmra.mxu3 %v525_v47 }
  0x56   :  { %707 = vmatmul.f32.gmra.mxu1 %v523_v43 }
  0x8e   :  { %v71_v50 = vpop.f32.mrf.mxu0 }
  0x92   :  { %v79_v51 = vpop.f32.mrf.mxu2 }
  0x93   :  { %v120_v52 = vpop.f32.mrf.mxu1 }
  0x94   :  { %v121_v6 = vadd.f32 %v120_v52, %v71_v50 }
  0x97   :  { %v124_v53 = vpop.f32.mrf.mxu3  ;;  %v225_v54 = vpop.f32.mrf.mxu0 }
  0x98   :  { %v125_v15 = vadd.f32 %v124_v53, %v79_v51 }
  0x9a   :  { %v154_v55 = vpop.f32.mrf.mxu2 }
  0x9b   :  { %v254_v56 = vpop.f32.mrf.mxu1  ;;  %v155_v10 = vadd.f32 %v154_v55, %v121_v6 }
  0xa0   :  { %v186_v57 = vpop.f32.mrf.mxu3  ;;  %v229_v58 = vpop.f32.mrf.mxu0 }
  0xa1   :  { %v187_v11 = vadd.f32 %v186_v57, %v155_v10 }
  0xa2   :  { %v159_v59 = vpop.f32.mrf.mxu2 }
  0xa3   :  { %v258_v60 = vpop.f32.mrf.mxu1  ;;  %v226_v16 = vadd.f32 %v225_v54, %v187_v11  ;;  %v160_v17 = vadd.f32 %v159_v59, %v125_v15 }
  0xa5   :  { %v255_v19 = vadd.f32 %v254_v56, %v226_v16 }
  0xa8   :  { %v192_v61 = vpop.f32.mrf.mxu3  ;;  %v376_v62 = vpop.f32.mrf.mxu0 }
  0xa9   :  { %v193_v21 = vadd.f32 %v192_v61, %v160_v17 }
  0xaa   :  { %v293_v63 = vpop.f32.mrf.mxu2 }
  0xab   :  { %v408_v0 = vpop.f32.mrf.mxu1  ;;  %v294_v22 = vadd.f32 %v293_v63, %v255_v19  ;;  %v230_v25 = vadd.f32 %v229_v58, %v193_v21 }
  0xad   :  { %v259_v30 = vadd.f32 %v258_v60, %v230_v25 }
  0xb0   :  { %v342_v1 = vpop.f32.mrf.mxu3  ;;  %v381_v2 = vpop.f32.mrf.mxu0 }
  0xb1   :  { %v343_v27 = vadd.f32 %v342_v1, %v294_v22 }
  0xb2   :  { %v301_v3 = vpop.f32.mrf.mxu2 }
  0xb3   :  { %v414_v4 = vpop.f32.mrf.mxu1  ;;  %v377_v31 = vadd.f32 %v376_v62, %v343_v27  ;;  %v302_v28 = vadd.f32 %v301_v3, %v259_v30 }
  0xb5   :  { %v409_v35 = vadd.f32 %v408_v0, %v377_v31 }
  0xb8   :  { %v346_v7 = vpop.f32.mrf.mxu3  ;;  %v521_v8 = vpop.f32.mrf.mxu0 }
  0xb9   :  { %v347_v32 = vadd.f32 %v346_v7, %v302_v28 }
  0xba   :  { %v447_v5 = vpop.f32.mrf.mxu2 }
  0xbb   :  { %v570_v12 = vpop.f32.mrf.mxu1  ;;  %v448_v37 = vadd.f32 %v447_v5, %v409_v35  ;;  %v382_v40 = vadd.f32 %v381_v2, %v347_v32 }
  0xbc   :  { %v571_v33 = vadd.f32 %v570_v12, %v521_v8 }
  0xbd   :  { %v415_v49 = vadd.f32 %v414_v4, %v382_v40 }
  0xc0   :  { %v476_v14 = vpop.f32.mrf.mxu3  ;;  %v529_v18 = vpop.f32.mrf.mxu0 }
  0xc1   :  { %v477_v41 = vadd.f32 %v476_v14, %v448_v37 }
  0xc2   :  { %v451_v9 = vpop.f32.mrf.mxu2 }
  0xc3   :  { %v574_v24 = vpop.f32.mrf.mxu1  ;;  %v452_v53 = vadd.f32 %v451_v9, %v415_v49 }
  0xc4   :  { %v575_v42 = vadd.f32 %v574_v24, %v529_v18 }
  0xc8   :  { %v480_v23 = vpop.f32.mrf.mxu3  ;;  %v675_v20 = vpop.f32.mrf.mxu0 }
  0xc9   :  { %v481_v55 = vadd.f32 %v480_v23, %v452_v53 }
  0xca   :  { %v604_v29 = vpop.f32.mrf.mxu2 }
  0xcb   :  { %v605_v34 = vadd.f32 %v604_v29, %v571_v33  ;;  %v704_v26 = vpop.f32.mrf.mxu1 }
  0xd0   :  { %v636_v13 = vpop.f32.mrf.mxu3  ;;  %v679_v48 = vpop.f32.mrf.mxu0 }
  0xd1   :  { %v637_v36 = vadd.f32 %v636_v13, %v605_v34 }
  0xd2   :  { %v609_v39 = vpop.f32.mrf.mxu2 }
  0xd3   :  { %v676_v38 = vadd.f32 %v675_v20, %v637_v36  ;;  %v610_v45 = vadd.f32 %v609_v39, %v575_v42  ;;  %v708_v52 = vpop.f32.mrf.mxu1 }
  0xd5   :  { %v705_v43 = vadd.f32 %v704_v26, %v676_v38 }
  0xd7   :  { %v711_v46 = vadd.f32 %v705_v43, %v477_v41 }
  0xd8   :  { %v642_v47 = vpop.f32.mrf.mxu3 }
  0xd9   :  { %v717_v50 = vadd.f32 %v734_v44, %v711_v46  ;;  %v643_v51 = vadd.f32 %v642_v47, %v610_v45 }
  0xdb   :  { %720 = vst.msk [vmem:[%s1071_s7] sm:$0xff] %vm719_vm1, %v717_v50  ;;  %v680_v54 = vadd.f32 %v679_v48, %v643_v51 }
  0xdd   :  { %v709_v56 = vadd.f32 %v708_v52, %v680_v54 }
  0xdf   :  { %v712_v57 = vadd.f32 %v709_v56, %v481_v55 }
  0xe1   :  { %v718_v58 = vadd.f32 %v734_v44, %v712_v57 }
  0xe3   :  { %721 = vst.msk [vmem:[%s1071_s7 + $0x8] sm:$0xff] %vm719_vm1, %v718_v58 }

</bundles_post_ra>
